<compile_context>
chip_gen: v6e
topology: v6e:2x2x1
jax: 0.10.0
libtpu: 0.0.40
codegen_flags: <defaults>
</compile_context>

<pallas_src>
import math
import functools

import jax
import jax.numpy as jnp
from jax.experimental import pallas as pl
from jax.experimental.pallas import tpu as pltpu


def _mha2_kernel(h, d_k, dhid, outdim, B, S, mxu_dtype,
                 x_ref, w_ref, o_ref):
    """Single-step fused MHA2 forward.

    x_ref : (B*S, K_aug)                 rows of x with a ones column (bias) + zero pad
    w_ref : (K_aug, 2*dhid + h*outdim)   fused [Wq'/sqrt(d_k) | Wk' | Wvo_0..Wvo_{h-1}],
                                         bias row folded in at row `indim`
    o_ref : (rows, 1, 128) lane-dense output slab, or (B*S, outdim) fallback
    """
    M = B * S

    # Fused projection; all biases ride the matmul through the ones column of x.
    proj = jnp.dot(x_ref[...].astype(mxu_dtype), w_ref[...].astype(mxu_dtype),
                   preferred_element_type=jnp.float32)          # (M, 2*dhid + h*outdim)
    p3 = proj.reshape(B, S, proj.shape[-1])

    # Head-batched Q/K (head-major along the batch axis): (h*B, S, d_k).
    q_n = jnp.concatenate(
        [p3[:, :, i * d_k:(i + 1) * d_k] for i in range(h)], axis=0)
    k_n = jnp.concatenate(
        [p3[:, :, dhid + i * d_k: dhid + (i + 1) * d_k] for i in range(h)], axis=0)

    # Scores: one batched contraction over n = h*B.  1/sqrt(d_k) is folded into Wq'.
    s = jnp.einsum('nqd,nkd->nqk', q_n.astype(mxu_dtype), k_n.astype(mxu_dtype),
                   preferred_element_type=jnp.float32)          # (h*B, S, S)
    s = s - jnp.max(s, axis=-1, keepdims=True)                  # keep the max-subtraction
    p = jnp.exp(s)
    denom = jnp.sum(p, axis=-1, keepdims=True)
    r = pl.reciprocal(denom, approx=True)                       # EUP slot (off the VPU)
    r = r * (2.0 - denom * r)                                   # Newton step -> ~f32 accuracy
    p = p * r                                                   # rows sum to 1 (+/- ~1e-7)

    # Fused value/output path: y = [P_0 | .. | P_{h-1}] @ stack_h(VO_h),  K = h*S.
    # The output projection (and its bias, distributed as bo'/h) is pre-folded into the
    # per-head VO slices, so this single contraction produces the final output.
    p_all = jnp.concatenate([p[i * B:(i + 1) * B] for i in range(h)], axis=-1)   # (B, S, h*S)
    vo_all = jnp.concatenate(
        [p3[:, :, 2 * dhid + i * outdim: 2 * dhid + (i + 1) * outdim] for i in range(h)],
        axis=1)                                                                   # (B, h*S, outdim)
    y = jnp.einsum('bqm,bmo->bqo', p_all.astype(mxu_dtype), vo_all.astype(mxu_dtype),
                   preferred_element_type=jnp.float32)                            # (B, S, outdim)

    if o_ref.ndim == 3:
        # Lane-dense packing: each 128-lane output row holds `g` consecutive logical
        # rows.  Spelled as keep-dim sublane slices + a lane-axis concat (well-supported
        # lowering) so the store is an unmasked full-width vst and the output DMA is one
        # contiguous transfer.  The wrapper reshapes back to (B, S, outdim).
        rows, _, lanes = o_ref.shape
        g = lanes // outdim
        y3 = y.reshape(rows, g, outdim)
        o_ref[...] = jnp.concatenate(
            [y3[:, j:j + 1, :] for j in range(g)], axis=-1).astype(o_ref.dtype)
    else:
        o_ref[...] = y.reshape(M, outdim).astype(o_ref.dtype)


def mha2_forward(x, w_aug, *, h, d_k, dhid, outdim, mxu_dtype=jnp.float32):
    """x: (B, S, indim); w_aug: fused bias-augmented weight slab from fold_params."""
    B, S, indim = x.shape
    M = B * S
    K_aug, proj_w = w_aug.shape
    assert proj_w == 2 * dhid + h * outdim

    # 2-D contiguous input slab: bias (ones) column folded in, zero-padded so the
    # contraction dim is a sublane multiple.
    x2d = x.reshape(M, indim)
    x_aug = jnp.zeros((M, K_aug), x.dtype)
    x_aug = x_aug.at[:, :indim].set(x2d).at[:, indim].set(1.0)

    # Lane-dense output slab when possible (unmasked stores, contiguous output DMA).
    total = M * outdim
    dense = (total % 128 == 0) and (outdim <= 128) and (128 % outdim == 0)
    out_block = (total // 128, 1, 128) if dense else (M, outdim)

    kernel = functools.partial(_mha2_kernel, h, d_k, dhid, outdim, B, S, mxu_dtype)

    out = pl.pallas_call(
        kernel,
        out_shape=jax.ShapeDtypeStruct(out_block, x.dtype),
        grid_spec=pltpu.PrefetchScalarGridSpec(
            num_scalar_prefetch=0,
            # Single grid step: the whole problem fits in a few KiB of VMEM; extra grid
            # steps only add per-step pipeline overhead at these sizes.
            grid=(1,),
            in_specs=[
                pl.BlockSpec((M, K_aug), lambda i: (0, 0)),
                pl.BlockSpec((K_aug, proj_w), lambda i: (0, 0)),
            ],
            out_specs=pl.BlockSpec(
                out_block,
                (lambda i: (0, 0, 0)) if dense else (lambda i: (0, 0))),
        ),
        compiler_params=pltpu.CompilerParams(
            dimension_semantics=("arbitrary",)),
    )(x_aug, w_aug)

    return out.reshape(B, S, outdim)


def init_params(key, indim, dhid, outdim):
    """Deterministic xavier-uniform weights (stored as (in, out)), biases = 0.01."""
    def xavier(k, fan_in, fan_out):
        bound = math.sqrt(6.0 / (fan_in + fan_out))
        return jax.random.uniform(k, (fan_in, fan_out), jnp.float32, -bound, bound)

    keys = jax.random.split(key, 6)
    return {
        'we': xavier(keys[0], indim, dhid), 'be': jnp.full((1, dhid), 0.01, jnp.float32),
        'wq': xavier(keys[1], dhid, dhid),  'bq': jnp.full((1, dhid), 0.01, jnp.float32),
        'wk': xavier(keys[2], dhid, dhid),  'bk': jnp.full((1, dhid), 0.01, jnp.float32),
        'wv': xavier(keys[3], dhid, dhid),  'bv': jnp.full((1, dhid), 0.01, jnp.float32),
        'w3': xavier(keys[4], dhid, dhid),  'b3': jnp.full((1, dhid), 0.01, jnp.float32),
        'wd': xavier(keys[5], dhid, outdim), 'bd': jnp.full((1, outdim), 0.01, jnp.float32),
    }


def fold_params(params, h, d_k, outdim):
    """Host-side algebraic folding of the activation-free linear chains.

    Returns the fused, bias-augmented weight slab  w_aug: (K_aug, 2*dhid + h*outdim)
    with columns [ Wq'/sqrt(d_k) | Wk' | Wvo_0 .. Wvo_{h-1} ], where
        Wq' = We@Wq,  Wk' = We@Wk,  Wvo_i = (We@Wv)[:, i] @ (W3@Wd)[i, :].
    Row `indim` holds the correspondingly folded biases (picked up by the ones column of
    the augmented input); the output bias bo' = b3@Wd + bd is distributed as bo'/h over
    the h value/output bias slices (exact because softmax rows sum to 1); remaining rows
    are zero padding up to a sublane multiple.  Exact algebra, fp rounding only.
    """
    we, be = params['we'], params['be']
    indim, dhid = we.shape
    scale = 1.0 / math.sqrt(d_k)

    wq = (we @ params['wq']) * scale
    bq = (be @ params['wq'] + params['bq']) * scale
    wk = we @ params['wk']
    bk = be @ params['wk'] + params['bk']
    wv = we @ params['wv']
    bv = be @ params['wv'] + params['bv']
    wo = params['w3'] @ params['wd']                  # (dhid, outdim)
    bo = params['b3'] @ params['wd'] + params['bd']   # (1, outdim)

    # NOTE: folding the output projection per head is only worthwhile when
    # h*outdim <= dhid (here 32 == 32, neutral); for outdim >> d_k keep the original
    # two-stage value path instead.
    wvo, bvo = [], []
    for i in range(h):
        sl = slice(i * d_k, (i + 1) * d_k)
        wvo.append(wv[:, sl] @ wo[sl, :])             # (indim, outdim)
        bvo.append(bv[:, sl] @ wo[sl, :] + bo / h)    # (1, outdim)

    w_cols = jnp.concatenate([wq, wk] + wvo, axis=1)  # (indim, 2*dhid + h*outdim)
    b_row = jnp.concatenate([bq, bk] + bvo, axis=1)   # (1,     2*dhid + h*outdim)

    k_aug = ((indim + 1 + 7) // 8) * 8                # sublane-pad the contraction dim
    w_aug = jnp.zeros((k_aug, w_cols.shape[1]), jnp.float32)
    w_aug = w_aug.at[:indim, :].set(w_cols).at[indim, :].set(b_row[0])
    return w_aug


def ref_forward(x, params, h, d_k):
    """Pure-JAX reference mirroring the PyTorch forward (eval mode, unfolded)."""
    B, S, _ = x.shape
    xe = x @ params['we'] + params['be']
    q = xe @ params['wq'] + params['bq']
    k = xe @ params['wk'] + params['bk']
    v = xe @ params['wv'] + params['bv']

    def split(t):  # (B, S, h*d_k) -> (B, h, S, d_k)
        return t.reshape(B, S, h, d_k).transpose(0, 2, 1, 3)

    qh, kh, vh = split(q), split(k), split(v)
    scores = jnp.einsum('bhqd,bhkd->bhqk', qh, kh) / math.sqrt(d_k)
    p = jax.nn.softmax(scores, axis=-1)
    o = jnp.einsum('bhqk,bhkd->bhqd', p, vh)
    o = o.transpose(0, 2, 1, 3).reshape(B, S, h * d_k)
    y = o @ params['w3'] + params['b3']
    return y @ params['wd'] + params['bd']


if __name__ == "__main__":
    # Module hyperparameters (small, consistent with the PyTorch defaults).
    h, dhid, indim, outdim = 4, 32, 8, 8
    d_k = dhid // h
    B, S = 4, indim   # the module asserts x.size(1) == indim -> seq length equals indim

    key = jax.random.PRNGKey(0)
    kx, kp = jax.random.split(key)
    x = jax.random.normal(kx, (B, S, indim), jnp.float32)
    params = init_params(kp, indim, dhid, outdim)
    w_aug = fold_params(params, h, d_k, outdim)

    # mxu_dtype=jnp.bfloat16 is the right choice on v6e/v7x at realistic dhid/S
    # (bf16-native MXU, half the weight-slab bytes); kept f32 here so the toy-shape
    # check against the unfolded reference stays tight.
    out = mha2_forward(x, w_aug, h=h, d_k=d_k, dhid=dhid, outdim=outdim,
                       mxu_dtype=jnp.float32)
    out = jax.block_until_ready(out)

    ref = ref_forward(x, params, h, d_k)
    assert out.shape == (B, S, outdim)
    # Folding is exact algebra; approx-reciprocal(+Newton) leaves the attention rows
    # unnormalized by ~1e-7 relative — well inside this tolerance.
    assert jnp.allclose(out, ref, atol=1e-3, rtol=1e-3), "mismatch vs reference"

    print("KERNEL_OK")
</pallas_src>

<mosaic_0001>
module attributes {stable_mosaic.version = 11 : i64} {
  func.func @_mha2_kernel(%arg0: i32, %arg1: memref<32x16xf32, #tpu.memory_space<vmem>>, %arg2: memref<16x96xf32, #tpu.memory_space<vmem>>, %arg3: memref<2x1x128xf32, #tpu.memory_space<vmem>>) attributes {dimension_semantics = [#tpu.dimension_semantics<arbitrary>], iteration_bounds = array<i64: 1>, scalar_prefetch = 0 : i64, scratch_operands = 0 : i64, tpu.core_type = #tpu.core_type<tc>, window_params = [{pipeline_mode = #tpu.pipeline_mode<synchronous>, transform_indices = @transform_0, window_bounds = array<i64: 32, 16>}, {pipeline_mode = #tpu.pipeline_mode<synchronous>, transform_indices = @transform_1, window_bounds = array<i64: 16, 96>}, {pipeline_mode = #tpu.pipeline_mode<synchronous>, transform_indices = @transform_2, window_bounds = array<i64: 2, 1, 128>}]} {
    %c0 = arith.constant 0 : index
    %c0_0 = arith.constant 0 : index
    %0 = vector.load %arg1[%c0, %c0_0] : memref<32x16xf32, #tpu.memory_space<vmem>>, vector<32x16xf32>
    %c0_1 = arith.constant 0 : index
    %c0_2 = arith.constant 0 : index
    %1 = vector.load %arg2[%c0_1, %c0_2] : memref<16x96xf32, #tpu.memory_space<vmem>>, vector<16x96xf32>
    %cst = arith.constant dense<0.000000e+00> : vector<32x96xf32>
    %2 = tpu.matmul %0, %1, %cst {dimension_numbers = #tpu.dot_dimension_numbers<[1], [0], [0], [1], [0, 0, 1, 1], [], []>} : vector<32x16xf32>, vector<16x96xf32>, vector<32x96xf32> -> vector<32x96xf32>
    %3 = vector.shape_cast %2 : vector<32x96xf32> to vector<4x8x96xf32>
    %4 = vector.extract_strided_slice %3 {offsets = [0, 0, 0], sizes = [4, 8, 8], strides = [1, 1, 1]} : vector<4x8x96xf32> to vector<4x8x8xf32>
    %5 = vector.extract_strided_slice %3 {offsets = [0, 0, 8], sizes = [4, 8, 8], strides = [1, 1, 1]} : vector<4x8x96xf32> to vector<4x8x8xf32>
    %6 = vector.extract_strided_slice %3 {offsets = [0, 0, 16], sizes = [4, 8, 8], strides = [1, 1, 1]} : vector<4x8x96xf32> to vector<4x8x8xf32>
    %7 = vector.extract_strided_slice %3 {offsets = [0, 0, 24], sizes = [4, 8, 8], strides = [1, 1, 1]} : vector<4x8x96xf32> to vector<4x8x8xf32>
    %8 = tpu.concatenate %4, %5, %6, %7 in 0 : vector<4x8x8xf32>, vector<4x8x8xf32>, vector<4x8x8xf32>, vector<4x8x8xf32> -> vector<16x8x8xf32>
    %9 = vector.extract_strided_slice %3 {offsets = [0, 0, 32], sizes = [4, 8, 8], strides = [1, 1, 1]} : vector<4x8x96xf32> to vector<4x8x8xf32>
    %10 = vector.extract_strided_slice %3 {offsets = [0, 0, 40], sizes = [4, 8, 8], strides = [1, 1, 1]} : vector<4x8x96xf32> to vector<4x8x8xf32>
    %11 = vector.extract_strided_slice %3 {offsets = [0, 0, 48], sizes = [4, 8, 8], strides = [1, 1, 1]} : vector<4x8x96xf32> to vector<4x8x8xf32>
    %12 = vector.extract_strided_slice %3 {offsets = [0, 0, 56], sizes = [4, 8, 8], strides = [1, 1, 1]} : vector<4x8x96xf32> to vector<4x8x8xf32>
    %13 = tpu.concatenate %9, %10, %11, %12 in 0 : vector<4x8x8xf32>, vector<4x8x8xf32>, vector<4x8x8xf32>, vector<4x8x8xf32> -> vector<16x8x8xf32>
    "tpu.trace_start"() <{level = 10 : i32, message = "nqd,nkd->nqk"}> : () -> ()
    %cst_3 = arith.constant dense<0.000000e+00> : vector<16x8x8xf32>
    %14 = tpu.matmul %8, %13, %cst_3 {dimension_numbers = #tpu.dot_dimension_numbers<[2], [2], [1], [1], [0, 0, 0, 1, 1, 1], [0], [0]>} : vector<16x8x8xf32>, vector<16x8x8xf32>, vector<16x8x8xf32> -> vector<16x8x8xf32>
    "tpu.trace_stop"() : () -> ()
    %cst_4 = arith.constant dense<0xFF800000> : vector<16x8xf32>
    %15 = vector.multi_reduction <maximumf>, %14, %cst_4 [2] : vector<16x8x8xf32> to vector<16x8xf32>
    %16 = vector.shape_cast %15 : vector<16x8xf32> to vector<16x8x1xf32>
    %17 = vector.broadcast %16 : vector<16x8x1xf32> to vector<16x8x8xf32>
    %18 = arith.subf %14, %17 : vector<16x8x8xf32>
    %19 = math.exp %18 : vector<16x8x8xf32>
    %cst_5 = arith.constant dense<0.000000e+00> : vector<16x8xf32>
    %20 = vector.multi_reduction <add>, %19, %cst_5 [2] : vector<16x8x8xf32> to vector<16x8xf32>
    %21 = vector.shape_cast %20 : vector<16x8xf32> to vector<16x8x1xf32>
    %22 = tpu.reciprocal %21 {approx = true} : vector<16x8x1xf32> -> vector<16x8x1xf32>
    %23 = arith.mulf %21, %22 : vector<16x8x1xf32>
    %cst_6 = arith.constant 2.000000e+00 : f32
    %24 = vector.broadcast %cst_6 : f32 to vector<16x8x1xf32>
    %25 = arith.subf %24, %23 : vector<16x8x1xf32>
    %26 = arith.mulf %22, %25 : vector<16x8x1xf32>
    %27 = vector.broadcast %26 : vector<16x8x1xf32> to vector<16x8x8xf32>
    %28 = arith.mulf %19, %27 : vector<16x8x8xf32>
    %29 = vector.extract_strided_slice %28 {offsets = [0, 0, 0], sizes = [4, 8, 8], strides = [1, 1, 1]} : vector<16x8x8xf32> to vector<4x8x8xf32>
    %30 = vector.extract_strided_slice %28 {offsets = [4, 0, 0], sizes = [4, 8, 8], strides = [1, 1, 1]} : vector<16x8x8xf32> to vector<4x8x8xf32>
    %31 = vector.extract_strided_slice %28 {offsets = [8, 0, 0], sizes = [4, 8, 8], strides = [1, 1, 1]} : vector<16x8x8xf32> to vector<4x8x8xf32>
    %32 = vector.extract_strided_slice %28 {offsets = [12, 0, 0], sizes = [4, 8, 8], strides = [1, 1, 1]} : vector<16x8x8xf32> to vector<4x8x8xf32>
    %33 = tpu.concatenate %29, %30, %31, %32 in 2 : vector<4x8x8xf32>, vector<4x8x8xf32>, vector<4x8x8xf32>, vector<4x8x8xf32> -> vector<4x8x32xf32>
    %34 = vector.extract_strided_slice %3 {offsets = [0, 0, 64], sizes = [4, 8, 8], strides = [1, 1, 1]} : vector<4x8x96xf32> to vector<4x8x8xf32>
    %35 = vector.extract_strided_slice %3 {offsets = [0, 0, 72], sizes = [4, 8, 8], strides = [1, 1, 1]} : vector<4x8x96xf32> to vector<4x8x8xf32>
    %36 = vector.extract_strided_slice %3 {offsets = [0, 0, 80], sizes = [4, 8, 8], strides = [1, 1, 1]} : vector<4x8x96xf32> to vector<4x8x8xf32>
    %37 = vector.extract_strided_slice %3 {offsets = [0, 0, 88], sizes = [4, 8, 8], strides = [1, 1, 1]} : vector<4x8x96xf32> to vector<4x8x8xf32>
    %38 = tpu.concatenate %34, %35, %36, %37 in 1 : vector<4x8x8xf32>, vector<4x8x8xf32>, vector<4x8x8xf32>, vector<4x8x8xf32> -> vector<4x32x8xf32>
    "tpu.trace_start"() <{level = 10 : i32, message = "bqm,bmo->bqo"}> : () -> ()
    %cst_7 = arith.constant dense<0.000000e+00> : vector<4x8x8xf32>
    %39 = tpu.matmul %33, %38, %cst_7 {dimension_numbers = #tpu.dot_dimension_numbers<[2], [1], [1], [2], [0, 0, 0, 1, 1, 2], [0], [0]>} : vector<4x8x32xf32>, vector<4x32x8xf32>, vector<4x8x8xf32> -> vector<4x8x8xf32>
    "tpu.trace_stop"() : () -> ()
    %40 = vector.shape_cast %39 : vector<4x8x8xf32> to vector<2x16x8xf32>
    %41 = vector.extract_strided_slice %40 {offsets = [0, 0, 0], sizes = [2, 1, 8], strides = [1, 1, 1]} : vector<2x16x8xf32> to vector<2x1x8xf32>
    %42 = vector.extract_strided_slice %40 {offsets = [0, 1, 0], sizes = [2, 1, 8], strides = [1, 1, 1]} : vector<2x16x8xf32> to vector<2x1x8xf32>
    %43 = vector.extract_strided_slice %40 {offsets = [0, 2, 0], sizes = [2, 1, 8], strides = [1, 1, 1]} : vector<2x16x8xf32> to vector<2x1x8xf32>
    %44 = vector.extract_strided_slice %40 {offsets = [0, 3, 0], sizes = [2, 1, 8], strides = [1, 1, 1]} : vector<2x16x8xf32> to vector<2x1x8xf32>
    %45 = vector.extract_strided_slice %40 {offsets = [0, 4, 0], sizes = [2, 1, 8], strides = [1, 1, 1]} : vector<2x16x8xf32> to vector<2x1x8xf32>
    %46 = vector.extract_strided_slice %40 {offsets = [0, 5, 0], sizes = [2, 1, 8], strides = [1, 1, 1]} : vector<2x16x8xf32> to vector<2x1x8xf32>
    %47 = vector.extract_strided_slice %40 {offsets = [0, 6, 0], sizes = [2, 1, 8], strides = [1, 1, 1]} : vector<2x16x8xf32> to vector<2x1x8xf32>
    %48 = vector.extract_strided_slice %40 {offsets = [0, 7, 0], sizes = [2, 1, 8], strides = [1, 1, 1]} : vector<2x16x8xf32> to vector<2x1x8xf32>
    %49 = vector.extract_strided_slice %40 {offsets = [0, 8, 0], sizes = [2, 1, 8], strides = [1, 1, 1]} : vector<2x16x8xf32> to vector<2x1x8xf32>
    %50 = vector.extract_strided_slice %40 {offsets = [0, 9, 0], sizes = [2, 1, 8], strides = [1, 1, 1]} : vector<2x16x8xf32> to vector<2x1x8xf32>
    %51 = vector.extract_strided_slice %40 {offsets = [0, 10, 0], sizes = [2, 1, 8], strides = [1, 1, 1]} : vector<2x16x8xf32> to vector<2x1x8xf32>
    %52 = vector.extract_strided_slice %40 {offsets = [0, 11, 0], sizes = [2, 1, 8], strides = [1, 1, 1]} : vector<2x16x8xf32> to vector<2x1x8xf32>
    %53 = vector.extract_strided_slice %40 {offsets = [0, 12, 0], sizes = [2, 1, 8], strides = [1, 1, 1]} : vector<2x16x8xf32> to vector<2x1x8xf32>
    %54 = vector.extract_strided_slice %40 {offsets = [0, 13, 0], sizes = [2, 1, 8], strides = [1, 1, 1]} : vector<2x16x8xf32> to vector<2x1x8xf32>
    %55 = vector.extract_strided_slice %40 {offsets = [0, 14, 0], sizes = [2, 1, 8], strides = [1, 1, 1]} : vector<2x16x8xf32> to vector<2x1x8xf32>
    %56 = vector.extract_strided_slice %40 {offsets = [0, 15, 0], sizes = [2, 1, 8], strides = [1, 1, 1]} : vector<2x16x8xf32> to vector<2x1x8xf32>
    %57 = tpu.concatenate %41, %42, %43, %44, %45, %46, %47, %48, %49, %50, %51, %52, %53, %54, %55, %56 in 2 : vector<2x1x8xf32>, vector<2x1x8xf32>, vector<2x1x8xf32>, vector<2x1x8xf32>, vector<2x1x8xf32>, vector<2x1x8xf32>, vector<2x1x8xf32>, vector<2x1x8xf32>, vector<2x1x8xf32>, vector<2x1x8xf32>, vector<2x1x8xf32>, vector<2x1x8xf32>, vector<2x1x8xf32>, vector<2x1x8xf32>, vector<2x1x8xf32>, vector<2x1x8xf32> -> vector<2x1x128xf32>
    %c0_8 = arith.constant 0 : index
    %c0_9 = arith.constant 0 : index
    %c0_10 = arith.constant 0 : index
    %58 = vector.load %arg3[%c0_8, %c0_9, %c0_10] : memref<2x1x128xf32, #tpu.memory_space<vmem>>, vector<2x1x128xf32>
    tpu.vector_store %arg3[%c0_8, %c0_9, %c0_10], %57 {strides = array<i32>} : memref<2x1x128xf32, #tpu.memory_space<vmem>>, vector<2x1x128xf32>,
    return
  }
  func.func @transform_0(%arg0: i32) -> (i32, i32) {
    %c0_i32 = arith.constant 0 : i32
    %c0_i32_0 = arith.constant 0 : i32
    %c0_i32_1 = arith.constant 0 : i32
    return %c0_i32, %c0_i32_0 : i32, i32
  }
  func.func @transform_1(%arg0: i32) -> (i32, i32) {
    %c0_i32 = arith.constant 0 : i32
    %c0_i32_0 = arith.constant 0 : i32
    %c0_i32_1 = arith.constant 0 : i32
    return %c0_i32, %c0_i32_0 : i32, i32
  }
  func.func @transform_2(%arg0: i32) -> (i32, i32, i32) {
    %c0_i32 = arith.constant 0 : i32
    %c0_i32_0 = arith.constant 0 : i32
    %c0_i32_1 = arith.constant 0 : i32
    %c0_i32_2 = arith.constant 0 : i32
    return %c0_i32, %c0_i32_0, %c0_i32_1 : i32, i32, i32
  }
}

</mosaic_0001>

<bundles_post_ra>
// kernel: tpu_custom_call.1
= control target key start
LH: loop header
LB: loop body
LE: loop exit
PB: predicated region body
PF: predicated region fallthrough
CT: control target
= control target key end

     0   :  { %vm18_vm0 = vcmask 130048   ;;  %s3076_s0 = inlined_call_operand.vmem [shape: f32[32,16], index: 0, kind: input, shape index: {}]   ;;  %s3077_s1 = inlined_call_operand.vmem [shape: f32[16,96], index: 1, kind: input, shape index: {}]   ;;  %s3078_s2 = inlined_call_operand.hbm [shape: f32[2,1,128], index: 2, kind: output, shape index: {}]  }
   0x1   :  { %v17_v0 = vld [vmem:[%s3077_s1 + $0x8] sm:$0xff]  ;;  %v16_v1 = vld [vmem:[%s3077_s1] sm:$0xff] }
   0x2   :  { %v12_v2 = vld [vmem:[%s3076_s0] sm:$0xff]  ;;  %2266 = vmatprep.subr.mxu0 %v17_v0  ;;  %v13_v3 = vld [vmem:[%s3076_s0 + $0x8] sm:$0xff] }
   0x3   :  { %2270 = vmatprep.mubr.msk.f32.mxu0 %vm18_vm0, %v12_v2  ;;  %2267 = vmatpush3.msra.mxu0 %v17_v0 }
   0x4   :  { %7 = vsyncpa [#allocation3], 0  ;;  %2268 = vmatprep.subr.mxu0 %v16_v1  ;;  %v14_v4 = vld [vmem:[%s3076_s0 + $0x10] sm:$0xff]  ;;  %v15_v5 = vld [vmem:[%s3076_s0 + $0x18] sm:$0xff]  ;;  %s2505_s20 = smov 120   ;;  %s2506_s21 = smov 112  }
   0x5   :  { %2269 = vmatpush3.msra.mxu0 %v16_v1  ;;  %v2507_v10 = vmov 0.0   ;;  %s2508_s0 = smov 104   ;;  %vm2509_vm1 = vmmov 0   ;;  %s2510_s22 = smov 96   ;;  %vm146_vm2 = vcmask 64512   ;;  %vm1641_vm3 = vcmask 195584  }
   0x6   :  { %2271 = vmatmul.mubr.msk.f32.vlgmr.msra.gmra.mxu0 %vm18_vm0, %v13_v3  ;;  %2286 = vmatprep.subr.mxu0 %v2507_v10  ;;  %s2511_s23 = smov 64   ;;  %s2512_s24 = smov 8   ;;  %vm1658_vm4 = vcmask 261120   ;;  %vm2117_vm5 = vcmask 326656   ;;  %vm2120_vm6 = vcmask 392192   ;;  %vm2123_vm7 = vcmask 457728  }
   0x7   :  { %2273 = vmatprep.mubr.msk.f32.mxu0 %vm18_vm0, %v14_v4  ;;  %2276 = vmatprep.subr.mxu1 %v2507_v10  ;;  %s2513_s25 = smov 16   ;;  %s2514_s26 = smov 24   ;;  %vm2126_vm8 = vcmask 523264   ;;  %vm2129_vm9 = vcmask 588800   ;;  %vm2132_vm10 = vcmask 654336   ;;  %vm2135_vm11 = vcmask 719872  }
   0x8   :  { %2278 = vmatprep.mubr.msk.f32.mxu1 %vm2509_vm1, %v2507_v10  ;;  %s2515_s27 = smov 72   ;;  %s2516_s28 = smov 80   ;;  %vm2138_vm12 = vcmask 785408   ;;  %vm2141_vm13 = vcmask 850944   ;;  %vm2144_vm14 = vcmask 916480   ;;  %vm2147_vm15 = vcmask 982016  }
   0x9   :  { %s2517_s29 = smov 88   ;;  %s2518_s30 = smov 32  }
   0xa   :  { %2274 = vmatmul.mubr.msk.f32.gmra.mxu0 %vm18_vm0, %v15_v5  ;;  %s2519_s3 = smov 40   ;;  %s2520_s4 = smov 48  }
   0xb   :  { %2288 = vmatprep.mubr.msk.f32.mxu0 %vm2509_vm1, %v2507_v10  ;;  %s2521_s5 = smov 56   ;;  %s2522_s6 = smov [#allocation2]  }
   0xc   :  { %s2157_s7 = sshll.u32 %s2522_s6, 4  ;;  %s2158_s7 = int_to_ptr.vmem [resolvable:$true] %s2157_s7 }
   0xd   :  { %s2483_s8 = scalar_lea.vmem %s2158_s7, 32  ;;  %p2488_p1 = scmp.lt.s32.totalorder %s2158_s7, %s2158_s7 }
   0xe   :  { %p2484_p0 = scmp.ne.s32.totalorder %s2158_s7, %s2483_s8  ;;  %p2489_p2 = scmp.lt.s32.totalorder %s2483_s8, %s2483_s8 }
  0x10   :  { %p2490_p3 = por %p2489_p2, %p2488_p1 }
  0x12   :  { %p2491_p4 = pnand %p2490_p3, %p2484_p0 }
  0xc6   :  { %v2561_v6 = vpop.f32.mrf.mxu0 }
  0xc7   :  { %122 = vrot.lane.b32.xlu1 %v2561_v6, %s2505_s20 }
  0xc8   :  { %v2565_v7 = vpop.f32.mrf.mxu0 }
  0xc9   :  { %120 = vrot.lane.b32.xlu0 %v2565_v7, %s2505_s20 }
  0xca   :  { %v2569_v8 = vpop.f32.mrf.mxu0 }
  0xcb   :  { %128 = vrot.lane.b32.xlu1 %v2565_v7, %s2506_s21 }
  0xcc   :  { %v2573_v9 = vpop.f32.mrf.mxu0 }
  0xcd   :  { %124 = vrot.lane.b32.xlu0 %v2573_v9, %s2505_s20 }
  0xcf   :  { %132 = vrot.lane.b32.xlu1 %v2573_v9, %s2506_s21 }
  0xd1   :  { %126 = vrot.lane.b32.xlu0 %v2569_v8, %s2505_s20 }
  0xd3   :  { %136 = vrot.lane.b32.xlu1 %v2565_v7, %s2508_s0 }
  0xd5   :  { %130 = vrot.lane.b32.xlu0 %v2561_v6, %s2506_s21 }
  0xd7   :  { %140 = vrot.lane.b32.xlu1 %v2573_v9, %s2508_s0 }
  0xd9   :  { %134 = vrot.lane.b32.xlu0 %v2569_v8, %s2506_s21 }
  0xdb   :  { %142 = vrot.lane.b32.xlu1 %v2569_v8, %s2508_s0 }
  0xdd   :  { %138 = vrot.lane.b32.xlu0 %v2561_v6, %s2508_s0 }
  0xdf   :  { %297 = vrot.lane.b32.xlu1 %v2573_v9, %s2510_s22 }
  0xe1   :  { %144 = vrot.lane.b32.xlu0 %v2565_v7, %s2510_s22 }
  0xe5   :  { %221 = vrot.lane.b32.xlu0 %v2561_v6, %s2510_s22 }
  0xe9   :  { %373 = vrot.lane.b32.xlu0 %v2569_v8, %s2510_s22 }
 0x139   :  { %v2607_v11 = vpop.permute.xlu1 %122 }
 0x13a   :  { %525 = vrot.lane.b32.xlu0 %v2607_v11, %s2510_s22 }
 0x13b   :  { %v2611_v12 = vpop.permute.xlu0 %120 }
 0x13c   :  { %449 = vrot.lane.b32.xlu1 %v2611_v12, %s2510_s22 }
 0x13d   :  { %v2615_v13 = vpop.permute.xlu1 %128 }
 0x13f   :  { %v2617_v14 = vpop.permute.xlu0 %124 }
 0x140   :  { %601 = vrot.lane.b32.xlu1 %v2617_v14, %s2510_s22 }
 0x141   :  { %v2621_v15 = vpop.permute.xlu1 %132 }
 0x143   :  { %v2623_v16 = vpop.permute.xlu0 %126 }
 0x144   :  { %753 = vrot.lane.b32.xlu1 %v2615_v13, %s2510_s22  ;;  %677 = vrot.lane.b32.xlu0 %v2623_v16, %s2510_s22 }
 0x145   :  { %v2629_v17 = vpop.permute.xlu1 %136 }
 0x147   :  { %v2631_v18 = vpop.permute.xlu0 %130 }
 0x148   :  { %905 = vrot.lane.b32.xlu1 %v2621_v15, %s2510_s22  ;;  %829 = vrot.lane.b32.xlu0 %v2631_v18, %s2510_s22 }
 0x149   :  { %v2637_v19 = vpop.permute.xlu1 %140 }
 0x14b   :  { %v2639_v20 = vpop.permute.xlu0 %134 }
 0x14c   :  { %1057 = vrot.lane.b32.xlu1 %v2629_v17, %s2510_s22  ;;  %981 = vrot.lane.b32.xlu0 %v2639_v20, %s2510_s22 }
 0x14d   :  { %v2645_v21 = vpop.permute.xlu1 %142 }
 0x14f   :  { %v2647_v22 = vpop.permute.xlu0 %138 }
 0x150   :  { %1209 = vrot.lane.b32.xlu1 %v2637_v19, %s2510_s22  ;;  %1133 = vrot.lane.b32.xlu0 %v2647_v22, %s2510_s22 }
 0x151   :  { %v298_v23 = vpop.permute.xlu1 %297 }
 0x152   :  { %2287 = vmatpush3.xpose.msk.msra.mxu0 %vm146_vm2, %v298_v23 }
 0x153   :  { %v145_v24 = vpop.permute.xlu0 %144  ;;  %2296 = vmatprep.subr.mxu0 %v2507_v10 }
 0x154   :  { %1285 = vrot.lane.b32.xlu1 %v2645_v21, %s2510_s22  ;;  %2277 = vmatpush3.xpose.msk.msra.mxu1 %vm146_vm2, %v145_v24 }
 0x155   :  { %2289 = vmatmul.mubr.msk.f32.vlgmr.msra.gmra.mxu0 %vm146_vm2, %v2573_v9  ;;  %2281 = vmatprep.subr.mxu1 %v2507_v10 }
 0x156   :  { %2298 = vmatprep.mubr.msk.f32.mxu0 %vm2509_vm1, %v2507_v10 }
 0x157   :  { %2279 = vmatmul.mubr.msk.f32.vlgmr.msra.gmra.mxu1 %vm146_vm2, %v2565_v7  ;;  %v222_v25 = vpop.permute.xlu0 %221 }
 0x158   :  { %2282 = vmatpush3.xpose.msk.msra.mxu1 %vm146_vm2, %v222_v25  ;;  %2283 = vmatprep.mubr.msk.f32.mxu1 %vm2509_vm1, %v2507_v10 }
 0x159   :  { %2291 = vmatprep.subr.mxu1 %v2507_v10 }
 0x15b   :  { %2284 = vmatmul.mubr.msk.f32.vlgmr.msra.gmra.mxu1 %vm146_vm2, %v2561_v6  ;;  %v374_v26 = vpop.permute.xlu0 %373 }
 0x15c   :  { %2292 = vmatpush3.xpose.msk.msra.mxu1 %vm146_vm2, %v374_v26  ;;  %2293 = vmatprep.mubr.msk.f32.mxu1 %vm2509_vm1, %v2507_v10 }
 0x15d   :  { %2301 = vmatprep.subr.mxu1 %v2507_v10 }
 0x15f   :  { %2294 = vmatmul.mubr.msk.f32.vlgmr.msra.gmra.mxu1 %vm146_vm2, %v2569_v8 }
 0x160   :  { %2303 = vmatprep.mubr.msk.f32.mxu1 %vm2509_vm1, %v2507_v10 }
 0x1ac   :  { %v526_v27 = vpop.permute.xlu0 %525 }
 0x1ad   :  { %2302 = vmatpush3.xpose.msk.msra.mxu1 %vm146_vm2, %v526_v27 }
 0x1ae   :  { %v450_v28 = vpop.permute.xlu1 %449  ;;  %2311 = vmatprep.subr.mxu1 %v2507_v10 }
 0x1af   :  { %2297 = vmatpush3.xpose.msk.msra.mxu0 %vm146_vm2, %v450_v28 }
 0x1b0   :  { %2304 = vmatmul.mubr.msk.f32.vlgmr.msra.gmra.mxu1 %vm146_vm2, %v2607_v11  ;;  %2306 = vmatprep.subr.mxu0 %v2507_v10 }
 0x1b1   :  { %2313 = vmatprep.mubr.msk.f32.mxu1 %vm2509_vm1, %v2507_v10 }
 0x1b2   :  { %2299 = vmatmul.mubr.msk.f32.vlgmr.msra.gmra.mxu0 %vm146_vm2, %v2611_v12  ;;  %v602_v29 = vpop.permute.xlu1 %601 }
 0x1b3   :  { %2307 = vmatpush3.xpose.msk.msra.mxu0 %vm146_vm2, %v602_v29  ;;  %2308 = vmatprep.mubr.msk.f32.mxu0 %vm2509_vm1, %v2507_v10 }
 0x1b4   :  { %2316 = vmatprep.subr.mxu0 %v2507_v10 }
 0x1b6   :  { %2309 = vmatmul.mubr.msk.f32.vlgmr.msra.gmra.mxu0 %vm146_vm2, %v2617_v14  ;;  %v754_v30 = vpop.permute.xlu1 %753  ;;  %v678_v31 = vpop.permute.xlu0 %677 }
 0x1b7   :  { %2312 = vmatpush3.xpose.msk.msra.mxu1 %vm146_vm2, %v678_v31  ;;  %2317 = vmatpush3.xpose.msk.msra.mxu0 %vm146_vm2, %v754_v30 }
 0x1b8   :  { %2318 = vmatprep.mubr.msk.f32.mxu0 %vm2509_vm1, %v2507_v10  ;;  %2326 = vmatprep.subr.mxu0 %v2507_v10 }
 0x1b9   :  { %2321 = vmatprep.subr.mxu1 %v2507_v10 }
 0x1ba   :  { %2319 = vmatmul.mubr.msk.f32.vlgmr.msra.gmra.mxu0 %vm146_vm2, %v2615_v13  ;;  %v906_v32 = vpop.permute.xlu1 %905  ;;  %2314 = vmatmul.mubr.msk.f32.vlgmr.msra.gmra.mxu1 %vm146_vm2, %v2623_v16  ;;  %v830_v33 = vpop.permute.xlu0 %829 }
 0x1bb   :  { %2322 = vmatpush3.xpose.msk.msra.mxu1 %vm146_vm2, %v830_v33  ;;  %2327 = vmatpush3.xpose.msk.msra.mxu0 %vm146_vm2, %v906_v32 }
 0x1bc   :  { %2323 = vmatprep.mubr.msk.f32.mxu1 %vm2509_vm1, %v2507_v10  ;;  %2328 = vmatprep.mubr.msk.f32.mxu0 %vm2509_vm1, %v2507_v10 }
 0x1bd   :  { %2336 = vmatprep.subr.mxu0 %v2507_v10  ;;  %2331 = vmatprep.subr.mxu1 %v2507_v10 }
 0x1be   :  { %2329 = vmatmul.mubr.msk.f32.vlgmr.msra.gmra.mxu0 %vm146_vm2, %v2621_v15  ;;  %v1058_v34 = vpop.permute.xlu1 %1057  ;;  %2324 = vmatmul.mubr.msk.f32.vlgmr.msra.gmra.mxu1 %vm146_vm2, %v2631_v18  ;;  %v982_v35 = vpop.permute.xlu0 %981 }
 0x1bf   :  { %2332 = vmatpush3.xpose.msk.msra.mxu1 %vm146_vm2, %v982_v35  ;;  %2337 = vmatpush3.xpose.msk.msra.mxu0 %vm146_vm2, %v1058_v34 }
 0x1c0   :  { %2333 = vmatprep.mubr.msk.f32.mxu1 %vm2509_vm1, %v2507_v10  ;;  %2338 = vmatprep.mubr.msk.f32.mxu0 %vm2509_vm1, %v2507_v10 }
 0x1c1   :  { %2346 = vmatprep.subr.mxu0 %v2507_v10  ;;  %2341 = vmatprep.subr.mxu1 %v2507_v10 }
 0x1c2   :  { %2339 = vmatmul.mubr.msk.f32.vlgmr.msra.gmra.mxu0 %vm146_vm2, %v2629_v17  ;;  %v1210_v36 = vpop.permute.xlu1 %1209  ;;  %2334 = vmatmul.mubr.msk.f32.vlgmr.msra.gmra.mxu1 %vm146_vm2, %v2639_v20  ;;  %v1134_v37 = vpop.permute.xlu0 %1133 }
 0x1c3   :  { %2342 = vmatpush3.xpose.msk.msra.mxu1 %vm146_vm2, %v1134_v37  ;;  %2347 = vmatpush3.xpose.msk.msra.mxu0 %vm146_vm2, %v1210_v36 }
 0x1c4   :  { %2343 = vmatprep.mubr.msk.f32.mxu1 %vm2509_vm1, %v2507_v10  ;;  %2348 = vmatprep.mubr.msk.f32.mxu0 %vm2509_vm1, %v2507_v10 }
 0x1c5   :  { %2351 = vmatprep.subr.mxu1 %v2507_v10  ;;  %2356 = vmatprep.subr.mxu0 %v2507_v10 }
 0x1c6   :  { %2349 = vmatmul.mubr.msk.f32.vlgmr.msra.gmra.mxu0 %vm146_vm2, %v2637_v19  ;;  %v1286_v38 = vpop.permute.xlu1 %1285  ;;  %2344 = vmatmul.mubr.msk.f32.vlgmr.msra.gmra.mxu1 %vm146_vm2, %v2647_v22 }
 0x1c7   :  { %2352 = vmatpush3.xpose.msk.msra.mxu1 %vm146_vm2, %v1286_v38  ;;  %2353 = vmatprep.mubr.msk.f32.mxu1 %vm2509_vm1, %v2507_v10 }
 0x1c8   :  { %2367 = vmatprep.subr.mxu1 %v2507_v10  ;;  %2364 = vmatprep.mubr.msk.f32.mxu0 %vm2509_vm1, %v2507_v10 }
 0x1ca   :  { %2354 = vmatmul.mubr.msk.f32.vlgmr.msra.gmra.mxu1 %vm146_vm2, %v2645_v21 }
 0x1cb   :  { %2375 = vmatprep.mubr.msk.f32.mxu1 %vm2509_vm1, %v2507_v10 }
 0x215   :  { %v2751_v39 = vpop.f32.mrf.mxu0 }
 0x216   :  { %v1367_v38 = vsel %vm146_vm2, %v2751_v39, -inf }
 0x217   :  { %v2753_v40 = vpop.f32.mrf.mxu1  ;;  %v2290_v41 = vpop.f32.mrf.mxu0 }
 0x218   :  { %v1361_v35 = vsel %vm146_vm2, %v2753_v40, -inf }
 0x219   :  { %v2280_v42 = vpop.f32.mrf.mxu1 }
 0x21b   :  { %v2755_v43 = vpop.f32.mrf.mxu1 }
 0x21c   :  { %v1364_v36 = vsel %vm146_vm2, %v2755_v43, -inf }
 0x21d   :  { %v2285_v44 = vpop.f32.mrf.mxu1 }
 0x21f   :  { %v2757_v45 = vpop.f32.mrf.mxu1 }
 0x220   :  { %v1370_v41 = vsel %vm146_vm2, %v2757_v45, -inf }
 0x221   :  { %v2295_v46 = vpop.f32.mrf.mxu1 }
 0x270   :  { %v2759_v47 = vpop.f32.mrf.mxu1 }
 0x271   :  { %v1376_v62 = vsel %vm146_vm2, %v2759_v47, -inf }
 0x272   :  { %v2761_v48 = vpop.f32.mrf.mxu0  ;;  %v2305_v49 = vpop.f32.mrf.mxu1 }
 0x273   :  { %v1373_v50 = vsel %vm146_vm2, %v2761_v48, -inf }
 0x274   :  { %v2300_v51 = vpop.f32.mrf.mxu0  ;;  %1374 = vmax.xlane.f32.xlu0 %v1373_v50 }
 0x276   :  { %v673_v52 = vpop.f32.mrf.mxu0 }
 0x277   :  { %v1379_v53 = vsel %vm146_vm2, %v673_v52, -inf }
 0x278   :  { %v2310_v54 = vpop.f32.mrf.mxu0  ;;  %1380 = vmax.xlane.f32.xlu0 %v1379_v53 }
 0x27a   :  { %v2766_v55 = vpop.f32.mrf.mxu1  ;;  %v825_v56 = vpop.f32.mrf.mxu0 }
 0x27b   :  { %v1385_v57 = vsel %vm146_vm2, %v825_v56, -inf  ;;  %v1382_v34 = vsel %vm146_vm2, %v2766_v55, -inf }
 0x27c   :  { %1386 = vmax.xlane.f32.xlu1 %v1385_v57  ;;  %v2315_v58 = vpop.f32.mrf.mxu1  ;;  %v2320_v59 = vpop.f32.mrf.mxu0 }
 0x27e   :  { %v901_v60 = vpop.f32.mrf.mxu1  ;;  %v2769_v61 = vpop.f32.mrf.mxu0 }
 0x27f   :  { %v1388_v4 = vsel %vm146_vm2, %v901_v60, -inf  ;;  %v1391_v26 = vsel %vm146_vm2, %v2769_v61, -inf }
 0x280   :  { %v2330_v63 = vpop.f32.mrf.mxu0  ;;  %1377 = vmax.xlane.f32.xlu1 %v1376_v62  ;;  %v2325_v0 = vpop.f32.mrf.mxu1 }
 0x282   :  { %v2773_v1 = vpop.f32.mrf.mxu1  ;;  %v1129_v2 = vpop.f32.mrf.mxu0 }
 0x283   :  { %v1397_v3 = vsel %vm146_vm2, %v1129_v2, -inf  ;;  %v1394_v32 = vsel %vm146_vm2, %v2773_v1, -inf }
 0x284   :  { %v2340_v5 = vpop.f32.mrf.mxu0  ;;  %1398 = vmax.xlane.f32.xlu0 %v1397_v3  ;;  %1389 = vmax.xlane.f32.xlu1 %v1388_v4  ;;  %v2335_v23 = vpop.f32.mrf.mxu1 }
 0x286   :  { %v1205_v24 = vpop.f32.mrf.mxu1  ;;  %v2777_v25 = vpop.f32.mrf.mxu0 }
 0x287   :  { %v1400_v27 = vsel %vm146_vm2, %v1205_v24, -inf  ;;  %v1403_v31 = vsel %vm146_vm2, %v2777_v25, -inf }
 0x288   :  { %v2350_v28 = vpop.f32.mrf.mxu0  ;;  %1392 = vmax.xlane.f32.xlu0 %v1391_v26  ;;  %1401 = vmax.xlane.f32.xlu1 %v1400_v27  ;;  %v2345_v29 = vpop.f32.mrf.mxu1 }
 0x28a   :  { %v2782_v30 = vpop.f32.mrf.mxu1 }
 0x28b   :  { %v1406_v37 = vsel %vm146_vm2, %v2782_v30, -inf }
 0x28c   :  { %1404 = vmax.xlane.f32.xlu0 %v1403_v31  ;;  %1395 = vmax.xlane.f32.xlu1 %v1394_v32  ;;  %v2355_v33 = vpop.f32.mrf.mxu1 }
 0x290   :  { %1383 = vmax.xlane.f32.xlu0 %v1382_v34  ;;  %1362 = vmax.xlane.f32.xlu1 %v1361_v35 }
 0x294   :  { %1365 = vmax.xlane.f32.xlu1 %v1364_v36  ;;  %1407 = vmax.xlane.f32.xlu0 %v1406_v37 }
 0x298   :  { %1368 = vmax.xlane.f32.xlu0 %v1367_v38 }
 0x29c   :  { %1371 = vmax.xlane.f32.xlu0 %v1370_v41 }
 0x2fd   :  { %v1375_v42 = vpop.xlane.xlu0 %1374 }
 0x2fe   :  { %v1413_v53 = vsub.f32 %v2761_v48, %v1375_v42 }
 0x300   :  { %v1433_v59 = vmul.f32 1.442695, %v1413_v53 }
 0x301   :  { %v1381_v44 = vpop.xlane.xlu0 %1380 }
 0x302   :  { %v1415_v46 = vsub.f32 %v673_v52, %v1381_v44 }
 0x304   :  { %v1437_v49 = vmul.f32 1.442695, %v1415_v46 }
 0x305   :  { %v1387_v50 = vpop.xlane.xlu1 %1386 }
 0x306   :  { %2419 = vpow2.f32 %v1437_v49  ;;  %v1417_v51 = vsub.f32 %v825_v56, %v1387_v50 }
 0x308   :  { %v1441_v54 = vmul.f32 1.442695, %v1417_v51 }
 0x309   :  { %v1378_v57 = vpop.xlane.xlu1 %1377 }
 0x30a   :  { %2421 = vpow2.f32 %v1441_v54  ;;  %v1414_v58 = vsub.f32 %v2759_v47, %v1378_v57 }
 0x30c   :  { %v1435_v62 = vmul.f32 1.442695, %v1414_v58 }
 0x30d   :  { %v1390_v63 = vpop.xlane.xlu1 %1389  ;;  %v1399_v0 = vpop.xlane.xlu0 %1398 }
 0x30e   :  { %2423 = vpow2.f32 %v1435_v62  ;;  %v1418_v3 = vsub.f32 %v901_v60, %v1390_v63  ;;  %v1421_v52 = vsub.f32 %v1129_v2, %v1399_v0 }
 0x30f   :  { %2425 = vpow2.f32 %v1433_v59 }
 0x310   :  { %v1443_v4 = vmul.f32 1.442695, %v1418_v3  ;;  %v1449_v27 = vmul.f32 1.442695, %v1421_v52 }
 0x311   :  { %v1402_v5 = vpop.xlane.xlu1 %1401  ;;  %v1393_v23 = vpop.xlane.xlu0 %1392 }
 0x312   :  { %v1422_v26 = vsub.f32 %v1205_v24, %v1402_v5  ;;  %v1419_v56 = vsub.f32 %v2769_v61, %v1393_v23  ;;  %2427 = vpow2.f32 %v1443_v4 }
 0x313   :  { %v2803_v48 = vpop.eup %2419 }
 0x314   :  { %v1445_v28 = vmul.f32 1.442695, %v1419_v56  ;;  %v1475_v47 = vsel %vm146_vm2, %v2803_v48, 0.0  ;;  %v1451_v60 = vmul.f32 1.442695, %v1422_v26 }
 0x315   :  { %v1396_v29 = vpop.xlane.xlu1 %1395  ;;  %1476 = vadd.xlane.f32.xlu0 %v1475_v47  ;;  %v1405_v31 = vpop.xlane.xlu0 %1404 }
 0x316   :  { %v1423_v32 = vsub.f32 %v2777_v25, %v1405_v31  ;;  %2429 = vpow2.f32 %v1445_v28  ;;  %v1420_v61 = vsub.f32 %v2773_v1, %v1396_v29 }
 0x317   :  { %v2808_v2 = vpop.eup %2421  ;;  %2431 = vpow2.f32 %v1449_v27 }
 0x318   :  { %v1453_v24 = vmul.f32 1.442695, %v1423_v32  ;;  %v1481_v33 = vsel %vm146_vm2, %v2808_v2, 0.0  ;;  %2433 = vpow2.f32 %v1451_v60  ;;  %v1447_v38 = vmul.f32 1.442695, %v1420_v61 }
 0x319   :  { %v1363_v34 = vpop.xlane.xlu1 %1362  ;;  %1482 = vadd.xlane.f32.xlu0 %v1481_v33  ;;  %v1384_v35 = vpop.xlane.xlu0 %1383 }
 0x31a   :  { %v1416_v36 = vsub.f32 %v2766_v55, %v1384_v35  ;;  %2435 = vpow2.f32 %v1453_v24  ;;  %v1409_v41 = vsub.f32 %v2753_v40, %v1363_v34 }
 0x31b   :  { %v2814_v37 = vpop.eup %2423 }
 0x31c   :  { %v2816_v25 = vpop.eup %2425  ;;  %v1439_v42 = vmul.f32 1.442695, %v1416_v36  ;;  %v1472_v1 = vsel %vm146_vm2, %v2814_v37, 0.0  ;;  %v1425_v50 = vmul.f32 1.442695, %v1409_v41 }
 0x31d   :  { %1473 = vadd.xlane.f32.xlu1 %v1472_v1  ;;  %v1366_v44 = vpop.xlane.xlu1 %1365  ;;  %v1408_v46 = vpop.xlane.xlu0 %1407  ;;  %v1469_v55 = vsel %vm146_vm2, %v2816_v25, 0.0 }
 0x31e   :  { %v1424_v49 = vsub.f32 %v2782_v30, %v1408_v46  ;;  %2437 = vpow2.f32 %v1439_v42  ;;  %v1410_v51 = vsub.f32 %v2755_v43, %v1366_v44 }
 0x31f   :  { %2439 = vpow2.f32 %v1447_v38  ;;  %v2825_v54 = vpop.eup %2427 }
 0x320   :  { %v1455_v53 = vmul.f32 1.442695, %v1424_v49  ;;  %v1427_v30 = vmul.f32 1.442695, %v1410_v51  ;;  %v1484_v62 = vsel %vm146_vm2, %v2825_v54, 0.0 }
 0x321   :  { %1470 = vadd.xlane.f32.xlu1 %v1469_v55  ;;  %v1369_v40 = vpop.xlane.xlu0 %1368 }
 0x322   :  { %v1411_v57 = vsub.f32 %v2751_v39, %v1369_v40  ;;  %2441 = vpow2.f32 %v1455_v53 }
 0x323   :  { %v2828_v58 = vpop.eup %2429  ;;  %2443 = vpow2.f32 %v1425_v50 }
 0x324   :  { %v1429_v59 = vmul.f32 1.442695, %v1411_v57  ;;  %v2832_v63 = vpop.eup %2431  ;;  %v1487_v43 = vsel %vm146_vm2, %v2828_v58, 0.0 }
 0x325   :  { %1485 = vadd.xlane.f32.xlu1 %v1484_v62  ;;  %v1372_v0 = vpop.xlane.xlu0 %1371  ;;  %1488 = vadd.xlane.f32.xlu0 %v1487_v43  ;;  %v2837_v3 = vpop.eup %2433  ;;  %v1493_v5 = vsel %vm146_vm2, %v2832_v63, 0.0 }
 0x326   :  { %2445 = vpow2.f32 %v1429_v59  ;;  %v1412_v39 = vsub.f32 %v2757_v45, %v1372_v0  ;;  %v1496_v45 = vsel %vm146_vm2, %v2837_v3, 0.0 }
 0x327   :  { %v2839_v4 = vpop.eup %2435  ;;  %2447 = vpow2.f32 %v1427_v30 }
 0x328   :  { %v1431_v52 = vmul.f32 1.442695, %v1412_v39  ;;  %v1499_v23 = vsel %vm146_vm2, %v2839_v4, 0.0 }
 0x329   :  { %1494 = vadd.xlane.f32.xlu1 %v1493_v5  ;;  %1500 = vadd.xlane.f32.xlu0 %v1499_v23 }
 0x32a   :  { %2449 = vpow2.f32 %v1431_v52 }
 0x32b   :  { %v2845_v26 = vpop.eup %2437 }
 0x32c   :  { %v2849_v56 = vpop.eup %2439  ;;  %v1478_v27 = vsel %vm146_vm2, %v2845_v26, 0.0 }
 0x32d   :  { %1497 = vadd.xlane.f32.xlu1 %v1496_v45  ;;  %1479 = vadd.xlane.f32.xlu0 %v1478_v27  ;;  %v1490_v47 = vsel %vm146_vm2, %v2849_v56, 0.0 }
 0x32f   :  { %v2853_v28 = vpop.eup %2441 }
 0x330   :  { %v2857_v29 = vpop.eup %2443  ;;  %v1502_v31 = vsel %vm146_vm2, %v2853_v28, 0.0 }
 0x331   :  { %1491 = vadd.xlane.f32.xlu1 %v1490_v47  ;;  %1503 = vadd.xlane.f32.xlu0 %v1502_v31  ;;  %v1457_v32 = vsel %vm146_vm2, %v2857_v29, 0.0 }
 0x333   :  { %v2861_v60 = vpop.eup %2445 }
 0x334   :  { %v1463_v61 = vsel %vm146_vm2, %v2861_v60, 0.0  ;;  %v2867_v24 = vpop.eup %2447 }
 0x335   :  { %1458 = vadd.xlane.f32.xlu1 %v1457_v32  ;;  %1464 = vadd.xlane.f32.xlu0 %v1463_v61  ;;  %v1460_v34 = vsel %vm146_vm2, %v2867_v24, 0.0 }
 0x337   :  { %v2869_v33 = vpop.eup %2449 }
 0x338   :  { %v1466_v35 = vsel %vm146_vm2, %v2869_v33, 0.0 }
 0x339   :  { %1461 = vadd.xlane.f32.xlu1 %v1460_v34  ;;  %1467 = vadd.xlane.f32.xlu0 %v1466_v35 }
 0x34a   :  { %1652 = vrot.lane.b32.xlu1 %v2629_v17, %s2511_s23 }
 0x34e   :  { %1648 = vrot.lane.b32.xlu1 %v2611_v12, %s2511_s23 }
 0x34f   :  { %1650 = vrot.lane.b32.xlu0 %v2615_v13, %s2511_s23 }
 0x352   :  { %1646 = vrot.lane.b32.xlu1 %v2565_v7, %s2511_s23 }
 0x353   :  { %1823 = vrot.lane.b32.xlu0 %v2637_v19, %s2511_s23 }
 0x356   :  { %1738 = vrot.lane.b32.xlu1 %v2647_v22, %s2511_s23 }
 0x357   :  { %1821 = vrot.lane.b32.xlu0 %v2621_v15, %s2511_s23 }
 0x35a   :  { %1736 = vrot.lane.b32.xlu1 %v2631_v18, %s2511_s23 }
 0x35b   :  { %1734 = vrot.lane.b32.xlu0 %v2607_v11, %s2511_s23 }
 0x35e   :  { %1819 = vrot.lane.b32.xlu1 %v2617_v14, %s2511_s23 }
 0x35f   :  { %1732 = vrot.lane.b32.xlu0 %v2561_v6, %s2511_s23 }
 0x362   :  { %1817 = vrot.lane.b32.xlu1 %v2573_v9, %s2511_s23 }
 0x39e   :  { %v1477_v7 = vpop.xlane.xlu0 %1476 }
 0x39f   :  { %2451 = vrcp.f32 %v1477_v7 }
 0x3a2   :  { %v1483_v13 = vpop.xlane.xlu0 %1482 }
 0x3a6   :  { %v1474_v12 = vpop.xlane.xlu1 %1473 }
 0x3a7   :  { %2453 = vrcp.f32 %v1474_v12 }
 0x3a8   :  { %2455 = vrcp.f32 %v1483_v13 }
 0x3aa   :  { %v1471_v15 = vpop.xlane.xlu1 %1470 }
 0x3ab   :  { %2457 = vrcp.f32 %v1471_v15 }
 0x3ac   :  { %v2452_v14 = vpop.eup %2451 }
 0x3ad   :  { %v1527_v36 = vmul.f32 %v2452_v14, %v1477_v7 }
 0x3ae   :  { %v1486_v17 = vpop.xlane.xlu1 %1485  ;;  %v1489_v11 = vpop.xlane.xlu0 %1488 }
 0x3af   :  { %2459 = vrcp.f32 %v1486_v17  ;;  %v1543_v49 = vsub.f32 2.0, %v1527_v36 }
 0x3b0   :  { %2461 = vrcp.f32 %v1489_v11 }
 0x3b1   :  { %v1559_v43 = vmul.f32 %v2452_v14, %v1543_v49 }
 0x3b2   :  { %v1495_v18 = vpop.xlane.xlu1 %1494  ;;  %v1501_v19 = vpop.xlane.xlu0 %1500 }
 0x3b3   :  { %2463 = vrcp.f32 %v1495_v18  ;;  %v1575_v61 = vmul.f32 %v2803_v48, %v1559_v43 }
 0x3b4   :  { %v2454_v6 = vpop.eup %2453  ;;  %2465 = vrcp.f32 %v1501_v19 }
 0x3b5   :  { %v1526_v22 = vmul.f32 %v2454_v6, %v1474_v12  ;;  %v2456_v38 = vpop.eup %2455 }
 0x3b6   :  { %v1498_v9 = vpop.xlane.xlu1 %1497  ;;  %v1480_v42 = vpop.xlane.xlu0 %1479  ;;  %v1529_v50 = vmul.f32 %v2456_v38, %v1483_v13 }
 0x3b7   :  { %v1542_v41 = vsub.f32 2.0, %v1526_v22  ;;  %2467 = vrcp.f32 %v1498_v9 }
 0x3b8   :  { %v2458_v1 = vpop.eup %2457  ;;  %2469 = vrcp.f32 %v1480_v42  ;;  %v1545_v52 = vsub.f32 2.0, %v1529_v50 }
 0x3b9   :  { %v1558_v44 = vmul.f32 %v2454_v6, %v1542_v41  ;;  %v1525_v46 = vmul.f32 %v2458_v1, %v1471_v15 }
 0x3ba   :  { %v1492_v55 = vpop.xlane.xlu1 %1491  ;;  %v2899_v53 = vpop.xlane.xlu0 %1503  ;;  %v1561_v35 = vmul.f32 %v2456_v38, %v1545_v52 }
 0x3bb   :  { %v1541_v51 = vsub.f32 2.0, %v1525_v46  ;;  %2471 = vrcp.f32 %v1492_v55  ;;  %v1574_v40 = vmul.f32 %v2814_v37, %v1558_v44 }
 0x3bc   :  { %v2460_v57 = vpop.eup %2459  ;;  %2473 = vrcp.f32 %v2899_v53  ;;  %v1577_v38 = vmul.f32 %v2808_v2, %v1561_v35 }
 0x3bd   :  { %v2462_v30 = vpop.eup %2461  ;;  %v1557_v59 = vmul.f32 %v2458_v1, %v1541_v51  ;;  %v1530_v62 = vmul.f32 %v2460_v57, %v1486_v17  ;;  %1591 = vrot.lane.b32.xlu0 %v1574_v40, %s2512_s24 }
 0x3be   :  { %v1531_v0 = vmul.f32 %v2462_v30, %v1489_v11  ;;  %v2903_v39 = vpop.xlane.xlu1 %1458  ;;  %v2906_v23 = vpop.xlane.xlu0 %1464 }
 0x3bf   :  { %v1546_v5 = vsub.f32 2.0, %v1530_v62  ;;  %v1573_v45 = vmul.f32 %v2816_v25, %v1557_v59  ;;  %2475 = vrcp.f32 %v2903_v39 }
 0x3c0   :  { %v2464_v37 = vpop.eup %2463  ;;  %v1547_v27 = vsub.f32 2.0, %v1531_v0 }
 0x3c1   :  { %v1562_v47 = vmul.f32 %v2460_v57, %v1546_v5  ;;  %v1533_v31 = vmul.f32 %v2464_v37, %v1495_v18  ;;  %1589 = vrot.lane.b32.xlu1 %v1573_v45, %s2512_s24  ;;  %v2466_v34 = vpop.eup %2465 }
 0x3c2   :  { %v2910_v32 = vpop.xlane.xlu1 %1461  ;;  %v1563_v7 = vmul.f32 %v2462_v30, %v1547_v27  ;;  %v2913_v13 = vpop.xlane.xlu0 %1467  ;;  %v1535_v18 = vmul.f32 %v2466_v34, %v1501_v19 }
 0x3c3   :  { %v1549_v12 = vsub.f32 2.0, %v1533_v31  ;;  %v1578_v15 = vmul.f32 %v2825_v54, %v1562_v47  ;;  %2477 = vrcp.f32 %v2910_v32 }
 0x3c4   :  { %v2468_v17 = vpop.eup %2467  ;;  %v1579_v41 = vmul.f32 %v2828_v58, %v1563_v7  ;;  %2479 = vrcp.f32 %v2906_v23 }
 0x3c5   :  { %v2470_v25 = vpop.eup %2469  ;;  %v1534_v11 = vmul.f32 %v2468_v17, %v1498_v9  ;;  %1607 = vrot.lane.b32.xlu0 %v1578_v15, %s2513_s25  ;;  %1593 = vrot.lane.b32.xlu1 %v1575_v61, %s2512_s24  ;;  %v1565_v48 = vmul.f32 %v2464_v37, %v1549_v12  ;;  %v1551_v9 = vsub.f32 2.0, %v1535_v18  ;;  %2481 = vrcp.f32 %v2913_v13 }
 0x3c6   :  { %v1528_v14 = vmul.f32 %v2470_v25, %v1480_v42  ;;  %v1653_v6 = vpop.permute.xlu1 %1652  ;;  %v1651_v36 = vpop.permute.xlu0 %1650 }
 0x3c7   :  { %v1550_v22 = vsub.f32 2.0, %v1534_v11  ;;  %2357 = vmatpush3.msra.mxu0 %v1653_v6  ;;  %v1581_v2 = vmul.f32 %v2832_v63, %v1565_v48  ;;  %v1567_v50 = vmul.f32 %v2466_v34, %v1551_v9 }
 0x3c8   :  { %v2472_v54 = vpop.eup %2471  ;;  %v1544_v1 = vsub.f32 2.0, %v1528_v14  ;;  %2358 = vmatprep.subr.mxu0 %v2507_v10 }
 0x3c9   :  { %1605 = vrot.lane.b32.xlu0 %v1577_v38, %s2513_s25  ;;  %1609 = vrot.lane.b32.xlu1 %v1579_v41, %s2513_s25  ;;  %v1566_v42 = vmul.f32 %v2468_v17, %v1550_v22  ;;  %v1532_v46 = vmul.f32 %v2472_v54, %v1492_v55  ;;  %v2474_v58 = vpop.eup %2473  ;;  %v1583_v43 = vmul.f32 %v2839_v4, %v1567_v50 }
 0x3ca   :  { %2359 = vmatpush3.msra.mxu0 %v1651_v36  ;;  %v1649_v19 = vpop.permute.xlu1 %1648  ;;  %v1560_v44 = vmul.f32 %v2470_v25, %v1544_v1  ;;  %v2924_v49 = vpop.permute.xlu0 %1823  ;;  %v1536_v55 = vmul.f32 %v2474_v58, %v2899_v53 }
 0x3cb   :  { %2360 = vmatprep.subr.mxu0 %v2507_v10  ;;  %v1548_v40 = vsub.f32 2.0, %v1532_v46  ;;  %v1582_v63 = vmul.f32 %v2837_v3, %v1566_v42 }
 0x3cc   :  { %2361 = vmatpush3.msra.mxu0 %v1649_v19  ;;  %v1576_v30 = vmul.f32 %v2845_v26, %v1560_v44  ;;  %v1552_v62 = vsub.f32 2.0, %v1536_v55 }
 0x3cd   :  { %1621 = vrot.lane.b32.xlu0 %v1581_v2, %s2514_s26  ;;  %1908 = vrot.lane.b32.xlu1 %v2645_v21, %s2511_s23  ;;  %v1564_v59 = vmul.f32 %v2472_v54, %v1548_v40 }
 0x3ce   :  { %v1647_v51 = vpop.permute.xlu1 %1646  ;;  %2362 = vmatprep.subr.mxu0 %v2507_v10  ;;  %v2932_v57 = vpop.permute.xlu0 %1821  ;;  %v1568_v26 = vmul.f32 %v2474_v58, %v1552_v62 }
 0x3cf   :  { %2363 = vmatpush3.msra.mxu0 %v1647_v51  ;;  %v1580_v0 = vmul.f32 %v2849_v56, %v1564_v59  ;;  %v2476_v56 = vpop.eup %2475 }
 0x3d0   :  { %2378 = vmatprep.subr.mxu0 %v2507_v10  ;;  %v1521_v5 = vmul.f32 %v2476_v56, %v2903_v39 }
 0x3d1   :  { %1623 = vrot.lane.b32.xlu0 %v1582_v63, %s2514_s26  ;;  %1595 = vrot.lane.b32.xlu1 %v1576_v30, %s2512_s24 }
 0x3d2   :  { %v1739_v21 = vpop.permute.xlu1 %1738  ;;  %v1735_v53 = vpop.permute.xlu0 %1734  ;;  %v1537_v37 = vsub.f32 2.0, %v1521_v5 }
 0x3d3   :  { %2368 = vmatpush3.msra.mxu1 %v1739_v21 }
 0x3d4   :  { %2369 = vmatprep.subr.mxu1 %v2507_v10  ;;  %v1553_v34 = vmul.f32 %v2476_v56, %v1537_v37 }
 0x3d5   :  { %1906 = vrot.lane.b32.xlu0 %v2639_v20, %s2511_s23  ;;  %1625 = vrot.lane.b32.xlu1 %v1583_v43, %s2514_s26  ;;  %v1584_v20 = vmul.f32 %v2853_v28, %v1568_v26  ;;  %v2478_v28 = vpop.eup %2477 }
 0x3d6   :  { %v1737_v3 = vpop.permute.xlu1 %1736  ;;  %v1733_v4 = vpop.permute.xlu0 %1732  ;;  %v1522_v27 = vmul.f32 %v2478_v28, %v2910_v32  ;;  %v1569_v39 = vmul.f32 %v2857_v29, %v1553_v34 }
 0x3d7   :  { %2370 = vmatpush3.msra.mxu1 %v1737_v3  ;;  %v2480_v47 = vpop.eup %2479 }
 0x3d8   :  { %2371 = vmatprep.subr.mxu1 %v2507_v10  ;;  %v1523_v35 = vmul.f32 %v2480_v47, %v2906_v23  ;;  %v1538_v7 = vsub.f32 2.0, %v1522_v27  ;;  %v2482_v11 = vpop.eup %2481 }
 0x3d9   :  { %1904 = vrot.lane.b32.xlu0 %v2623_v16, %s2511_s23  ;;  %1611 = vrot.lane.b32.xlu1 %v1580_v0, %s2513_s25  ;;  %v1524_v22 = vmul.f32 %v2482_v11, %v2913_v13 }
 0x3da   :  { %2372 = vmatpush3.msra.mxu1 %v1735_v53  ;;  %v1820_v16 = vpop.permute.xlu1 %1819  ;;  %v1539_v17 = vsub.f32 2.0, %v1523_v35  ;;  %v1554_v25 = vmul.f32 %v2478_v28, %v1538_v7 }
 0x3db   :  { %2373 = vmatprep.subr.mxu1 %v2507_v10  ;;  %v1540_v13 = vsub.f32 2.0, %v1524_v22 }
 0x3dc   :  { %2374 = vmatpush3.msra.mxu1 %v1733_v4  ;;  %v1555_v48 = vmul.f32 %v2480_v47, %v1539_v17  ;;  %v1570_v23 = vmul.f32 %v2867_v24, %v1554_v25 }
 0x3dd   :  { %1902 = vrot.lane.b32.xlu1 %v2569_v8, %s2511_s23  ;;  %1627 = vrot.lane.b32.xlu0 %v1584_v20, %s2514_s26  ;;  %v1556_v44 = vmul.f32 %v2482_v11, %v1540_v13 }
 0x3de   :  { %2389 = vmatprep.subr.mxu1 %v2507_v10  ;;  %v1818_v52 = vpop.permute.xlu1 %1817  ;;  %v1571_v24 = vmul.f32 %v2861_v60, %v1555_v48 }
 0x3df   :  { %v1572_v58 = vmul.f32 %v2869_v33, %v1556_v44 }
 0x42f   :  { %v1592_v45 = vpop.permute.xlu0 %1591 }
 0x430   :  { %v1634_v29 = vsel %vm146_vm2, %v1570_v23, %v1592_v45 }
 0x433   :  { %v1590_v8 = vpop.permute.xlu1 %1589 }
 0x434   :  { %v1633_v18 = vsel %vm146_vm2, %v1569_v39, %v1590_v8 }
 0x437   :  { %v1594_v31 = vpop.permute.xlu1 %1593  ;;  %v1608_v61 = vpop.permute.xlu0 %1607 }
 0x438   :  { %v1638_v38 = vsel %vm18_vm0, %v1634_v29, %v1608_v61  ;;  %v1635_v9 = vsel %vm146_vm2, %v1571_v24, %v1594_v31 }
 0x43b   :  { %v1610_v12 = vpop.permute.xlu1 %1609  ;;  %v1606_v15 = vpop.permute.xlu0 %1605 }
 0x43c   :  { %v1637_v32 = vsel %vm18_vm0, %v1633_v18, %v1606_v15  ;;  %v1639_v19 = vsel %vm18_vm0, %v1635_v9, %v1610_v12 }
 0x43f   :  { %v1909_v14 = vpop.permute.xlu1 %1908  ;;  %v1622_v6 = vpop.permute.xlu0 %1621 }
 0x440   :  { %v1642_v36 = vsel %vm1641_vm3, %v1637_v32, %v1622_v6 }
 0x441   :  { %2365 = vmatmul.mubr.msk.f32.vlgmr.msra.gmra.mxu0 %vm1658_vm4, %v1642_v36 }
 0x442   :  { %2379 = vmatpush3.msra.mxu0 %v2924_v49  ;;  %2386 = vmatprep.mubr.msk.f32.mxu0 %vm2509_vm1, %v2507_v10 }
 0x443   :  { %2380 = vmatprep.subr.mxu0 %v2507_v10  ;;  %v1596_v41 = vpop.permute.xlu1 %1595  ;;  %v1624_v54 = vpop.permute.xlu0 %1623 }
 0x444   :  { %2381 = vmatpush3.msra.mxu0 %v2932_v57  ;;  %v1643_v1 = vsel %vm1641_vm3, %v1638_v38, %v1624_v54  ;;  %v1636_v50 = vsel %vm146_vm2, %v1572_v58, %v1596_v41 }
 0x445   :  { %2382 = vmatprep.subr.mxu0 %v2507_v10  ;;  %2376 = vmatmul.mubr.msk.f32.vlgmr.msra.gmra.mxu1 %vm1658_vm4, %v1643_v1 }
 0x446   :  { %2383 = vmatpush3.msra.mxu0 %v1820_v16  ;;  %2390 = vmatpush3.msra.mxu1 %v1909_v14 }
 0x447   :  { %2384 = vmatprep.subr.mxu0 %v2507_v10  ;;  %v1626_v42 = vpop.permute.xlu1 %1625  ;;  %2391 = vmatprep.subr.mxu1 %v2507_v10  ;;  %v1907_v60 = vpop.permute.xlu0 %1906 }
 0x448   :  { %v1644_v46 = vsel %vm1641_vm3, %v1639_v19, %v1626_v42  ;;  %2385 = vmatpush3.msra.mxu0 %v1818_v52  ;;  %2392 = vmatpush3.msra.mxu1 %v1907_v60 }
 0x449   :  { %2387 = vmatmul.mubr.msk.f32.vlgmr.msra.gmra.mxu0 %vm1658_vm4, %v1644_v46  ;;  %2393 = vmatprep.subr.mxu1 %v2507_v10 }
 0x44a   :  { %2397 = vmatprep.mubr.msk.f32.mxu1 %vm2509_vm1, %v2507_v10 }
 0x44b   :  { %v1612_v49 = vpop.permute.xlu1 %1611  ;;  %v1905_v2 = vpop.permute.xlu0 %1904 }
 0x44c   :  { %2394 = vmatpush3.msra.mxu1 %v1905_v2  ;;  %v1640_v51 = vsel %vm18_vm0, %v1636_v50, %v1612_v49 }
 0x44d   :  { %2395 = vmatprep.subr.mxu1 %v2507_v10 }
 0x44f   :  { %v1903_v40 = vpop.permute.xlu1 %1902  ;;  %v1628_v55 = vpop.permute.xlu0 %1627 }
 0x450   :  { %v1645_v57 = vsel %vm1641_vm3, %v1640_v51, %v1628_v55  ;;  %2396 = vmatpush3.msra.mxu1 %v1903_v40 }
 0x451   :  { %2398 = vmatmul.mubr.msk.f32.vlgmr.msra.gmra.mxu1 %vm1658_vm4, %v1645_v57 }
 0x501   :  { %v2995_v63 = vpop.f32.mrf.mxu0 }
 0x502   :  { %v1989_v56 = vrot.slane %v2995_v63, 1  ;;  %v1997_v5 = vrot.slane %v2995_v63, 2  ;;  %v2005_v45 = vrot.slane %v2995_v63, 3  ;;  %v2013_v37 = vrot.slane %v2995_v63, 4 }
 0x503   :  { %v2366_v30 = vpop.f32.mrf.mxu0  ;;  %v2021_v47 = vrot.slane %v2995_v63, 5  ;;  %v2029_v61 = vrot.slane %v2995_v63, 6  ;;  %v2037_v35 = vrot.slane %v2995_v63, 7 }
 0x505   :  { %v2997_v21 = vpop.f32.mrf.mxu1 }
 0x506   :  { %2047 = vrot.lane.b32.xlu0 %v2997_v21, %s2511_s23  ;;  %v2053_v33 = vrot.slane %v2997_v21, 1  ;;  %v2061_v43 = vrot.slane %v2997_v21, 2  ;;  %v2069_v53 = vrot.slane %v2997_v21, 3  ;;  %v2077_v0 = vrot.slane %v2997_v21, 4 }
 0x507   :  { %v2377_v10 = vpop.f32.mrf.mxu1  ;;  %v2085_v20 = vrot.slane %v2997_v21, 5  ;;  %v2093_v12 = vrot.slane %v2997_v21, 6  ;;  %v2101_v17 = vrot.slane %v2997_v21, 7 }
 0x509   :  { %v3002_v59 = vpop.f32.mrf.mxu0 }
 0x50a   :  { %2055 = vrot.lane.b32.xlu0 %v2053_v33, %s2515_s27  ;;  %v1990_v27 = vrot.slane %v3002_v59, 1  ;;  %v1998_v31 = vrot.slane %v3002_v59, 2  ;;  %v2006_v34 = vrot.slane %v3002_v59, 3  ;;  %v2014_v7 = vrot.slane %v3002_v59, 4 }
 0x50b   :  { %v2388_v62 = vpop.f32.mrf.mxu0  ;;  %v2022_v15 = vrot.slane %v3002_v59, 5  ;;  %v2030_v25 = vrot.slane %v3002_v59, 6  ;;  %v2038_v39 = vrot.slane %v3002_v59, 7 }
 0x50e   :  { %2063 = vrot.lane.b32.xlu0 %v2061_v43, %s2516_s28 }
 0x511   :  { %v1983_v3 = vpop.f32.mrf.mxu1 }
 0x512   :  { %2071 = vrot.lane.b32.xlu0 %v2069_v53, %s2517_s29  ;;  %2049 = vrot.lane.b32.xlu1 %v1983_v3, %s2511_s23  ;;  %v2054_v4 = vrot.slane %v1983_v3, 1  ;;  %v2062_v16 = vrot.slane %v1983_v3, 2  ;;  %v2070_v52 = vrot.slane %v1983_v3, 3  ;;  %v2078_v28 = vrot.slane %v1983_v3, 4 }
 0x513   :  { %v2399_v26 = vpop.f32.mrf.mxu1  ;;  %v2086_v8 = vrot.slane %v1983_v3, 5  ;;  %v2094_v11 = vrot.slane %v1983_v3, 6  ;;  %v2102_v18 = vrot.slane %v1983_v3, 7 }
 0x516   :  { %2079 = vrot.lane.b32.xlu0 %v2077_v0, %s2510_s22  ;;  %2057 = vrot.lane.b32.xlu1 %v2054_v4, %s2515_s27 }
 0x51a   :  { %2087 = vrot.lane.b32.xlu0 %v2085_v20, %s2508_s0  ;;  %2065 = vrot.lane.b32.xlu1 %v2062_v16, %s2516_s28 }
 0x51e   :  { %1991 = vrot.lane.b32.xlu0 %v1989_v56, %s2512_s24  ;;  %2073 = vrot.lane.b32.xlu1 %v2070_v52, %s2517_s29 }
 0x522   :  { %1999 = vrot.lane.b32.xlu0 %v1997_v5, %s2513_s25  ;;  %2081 = vrot.lane.b32.xlu1 %v2078_v28, %s2510_s22 }
 0x526   :  { %2007 = vrot.lane.b32.xlu0 %v2005_v45, %s2514_s26  ;;  %2089 = vrot.lane.b32.xlu1 %v2086_v8, %s2508_s0 }
 0x52a   :  { %2015 = vrot.lane.b32.xlu0 %v2013_v37, %s2518_s30  ;;  %1993 = vrot.lane.b32.xlu1 %v1990_v27, %s2512_s24 }
 0x52e   :  { %2023 = vrot.lane.b32.xlu0 %v2021_v47, %s2519_s3  ;;  %2001 = vrot.lane.b32.xlu1 %v1998_v31, %s2513_s25 }
 0x532   :  { %2031 = vrot.lane.b32.xlu0 %v2029_v61, %s2520_s4  ;;  %2009 = vrot.lane.b32.xlu1 %v2006_v34, %s2514_s26 }
 0x536   :  { %2039 = vrot.lane.b32.xlu0 %v2037_v35, %s2521_s5  ;;  %2017 = vrot.lane.b32.xlu1 %v2014_v7, %s2518_s30 }
 0x53a   :  { %2095 = vrot.lane.b32.xlu0 %v2093_v12, %s2506_s21  ;;  %2025 = vrot.lane.b32.xlu1 %v2022_v15, %s2519_s3 }
 0x53e   :  { %2103 = vrot.lane.b32.xlu0 %v2101_v17, %s2505_s20  ;;  %2033 = vrot.lane.b32.xlu1 %v2030_v25, %s2520_s4 }
 0x542   :  { %2041 = vrot.lane.b32.xlu1 %v2038_v39, %s2521_s5 }
 0x546   :  { %2097 = vrot.lane.b32.xlu1 %v2094_v11, %s2506_s21 }
 0x54a   :  { %2105 = vrot.lane.b32.xlu1 %v2102_v18, %s2505_s20 }
 0x578   :  { %v2048_v32 = vpop.permute.xlu0 %2047 }
 0x57c   :  { %v2056_v14 = vpop.permute.xlu0 %2055 }
 0x580   :  { %v2064_v6 = vpop.permute.xlu0 %2063 }
 0x584   :  { %v2050_v48 = vpop.permute.xlu1 %2049  ;;  %v2072_v22 = vpop.permute.xlu0 %2071 }
 0x588   :  { %v2058_v23 = vpop.permute.xlu1 %2057  ;;  %v2080_v36 = vpop.permute.xlu0 %2079 }
 0x58c   :  { %v2066_v29 = vpop.permute.xlu1 %2065  ;;  %v2088_v38 = vpop.permute.xlu0 %2087 }
 0x590   :  { %v2074_v41 = vpop.permute.xlu1 %2073  ;;  %v1992_v54 = vpop.permute.xlu0 %1991 }
 0x591   :  { %v2109_v46 = vsel %vm146_vm2, %v2995_v63, %v1992_v54 }
 0x594   :  { %v2082_v13 = vpop.permute.xlu1 %2081  ;;  %v2000_v24 = vpop.permute.xlu0 %1999 }
 0x595   :  { %v2111_v49 = vsel %vm18_vm0, %v2109_v46, %v2000_v24 }
 0x598   :  { %v2090_v1 = vpop.permute.xlu1 %2089  ;;  %v2008_v9 = vpop.permute.xlu0 %2007 }
 0x599   :  { %v2113_v50 = vsel %vm1641_vm3, %v2111_v49, %v2008_v9 }
 0x59c   :  { %v1994_v19 = vpop.permute.xlu1 %1993  ;;  %v2016_v42 = vpop.permute.xlu0 %2015 }
 0x59d   :  { %v2115_v51 = vsel %vm1658_vm4, %v2113_v50, %v2016_v42  ;;  %v2110_v26 = vsel %vm146_vm2, %v3002_v59, %v1994_v19 }
 0x5a0   :  { %v2002_v60 = vpop.permute.xlu1 %2001  ;;  %v2024_v44 = vpop.permute.xlu0 %2023 }
 0x5a1   :  { %v2118_v40 = vsel %vm2117_vm5, %v2115_v51, %v2024_v44  ;;  %v2112_v4 = vsel %vm18_vm0, %v2110_v26, %v2002_v60 }
 0x5a4   :  { %v2010_v2 = vpop.permute.xlu1 %2009  ;;  %v2032_v58 = vpop.permute.xlu0 %2031 }
 0x5a5   :  { %v2121_v55 = vsel %vm2120_vm6, %v2118_v40, %v2032_v58  ;;  %v2114_v52 = vsel %vm1641_vm3, %v2112_v4, %v2010_v2 }
 0x5a8   :  { %v2018_v57 = vpop.permute.xlu1 %2017  ;;  %v2040_v30 = vpop.permute.xlu0 %2039 }
 0x5a9   :  { %v2124_v63 = vsel %vm2123_vm7, %v2121_v55, %v2040_v30  ;;  %v2116_v28 = vsel %vm1658_vm4, %v2114_v52, %v2018_v57 }
 0x5aa   :  { %v2127_v21 = vsel %vm2126_vm8, %v2124_v63, %v2048_v32 }
 0x5ab   :  { %v2130_v10 = vsel %vm2129_vm9, %v2127_v21, %v2056_v14 }
 0x5ac   :  { %v2133_v33 = vsel %vm2132_vm10, %v2130_v10, %v2064_v6  ;;  %v2026_v62 = vpop.permute.xlu1 %2025  ;;  %v2096_v43 = vpop.permute.xlu0 %2095 }
 0x5ad   :  { %v2136_v53 = vsel %vm2135_vm11, %v2133_v33, %v2072_v22  ;;  %v2119_v45 = vsel %vm2117_vm5, %v2116_v28, %v2026_v62 }
 0x5ae   :  { %v2139_v3 = vsel %vm2138_vm12, %v2136_v53, %v2080_v36 }
 0x5af   :  { %v2142_v0 = vsel %vm2141_vm13, %v2139_v3, %v2088_v38 }
 0x5b0   :  { %v2145_v20 = vsel %vm2144_vm14, %v2142_v0, %v2096_v43  ;;  %v2034_v16 = vpop.permute.xlu1 %2033  ;;  %v2104_v56 = vpop.permute.xlu0 %2103 }
 0x5b1   :  { %v2148_v5 = vsel %vm2147_vm15, %v2145_v20, %v2104_v56  ;;  %v2122_v8 = vsel %vm2120_vm6, %v2119_v45, %v2034_v16 }
 0x5b2   :  { %2150 = vst [vmem:[#allocation2] sm:$0x1] %v2148_v5 }
 0x5b4   :  { %v2042_v59 = vpop.permute.xlu1 %2041 }
 0x5b5   :  { %v2125_v37 = vsel %vm2123_vm7, %v2122_v8, %v2042_v59 }
 0x5b6   :  { %v2128_v27 = vsel %vm2126_vm8, %v2125_v37, %v2050_v48 }
 0x5b7   :  { %v2131_v47 = vsel %vm2129_vm9, %v2128_v27, %v2058_v23 }
 0x5b8   :  { %v2134_v31 = vsel %vm2132_vm10, %v2131_v47, %v2066_v29  ;;  %v2098_v61 = vpop.permute.xlu1 %2097 }
 0x5b9   :  { %v2137_v34 = vsel %vm2135_vm11, %v2134_v31, %v2074_v41 }
 0x5ba   :  { %v2140_v35 = vsel %vm2138_vm12, %v2137_v34, %v2082_v13 }
 0x5bb   :  { %v2143_v7 = vsel %vm2141_vm13, %v2140_v35, %v2090_v1 }
 0x5bc   :  { %v2146_v12 = vsel %vm2144_vm14, %v2143_v7, %v2098_v61  ;;  %v2106_v15 = vpop.permute.xlu1 %2105 }
 0x5bd   :  { %v2149_v17 = vsel %vm2147_vm15, %v2146_v12, %v2106_v15 }
 0x5be   :  { %2151 = vst [vmem:[#allocation2 + $0x1] sm:$0x1] %v2149_v17 }
 0x5bf   :  { %2494 = shalt.err (!%p2491_p4)
}
 0x5c0   :  { %s2523_s9 = smov 1  }
 0x5c1   :  { %2163 = dma.vmem_to_hbm [thread:$0]  %s2158_s7, 32, %s3078_s2, [#allocation3], %s2513_s25, %s2513_s25, %s2523_s9  }
 0x5c2   :  { %2503 = dma.done.wait [#allocation3], 32  }
 0x5c3   :  { %2504 = vsyncadd [#allocation3], 4294967264 }
 0x5c4   :  { %2167 = vsyncpa [#allocation3], 1 }

</bundles_post_ra>
